<compile_context>
chip_gen: v7x
topology: tpu7x:2x2x1
jax: 0.10.0
libtpu: 0.0.40
codegen_flags: <defaults>
</compile_context>

<pallas_src>
import jax
import jax.numpy as jnp
from jax import lax
from jax.experimental import pallas as pl
from jax.experimental.pallas import tpu as pltpu


def _pick_tile(n, candidates):
    """Largest candidate tile that divides n (n is always a multiple of 128)."""
    for t in candidates:
        if n % t == 0:
            return t
    return n


def _device_kind():
    try:
        return jax.devices()[0].device_kind.lower()
    except Exception:
        return ""


def _vmem_limit_bytes(kind):
    if ("v5" in kind) or ("v6" in kind):
        return 64 * 1024 * 1024     # 128 MiB physical: raise from the 16/32 MiB default
    if "v7" in kind:
        return 48 * 1024 * 1024     # 64 MiB physical: leave compiler headroom
    return 32 * 1024 * 1024         # unknown / older: conservative


def _use_bf16_exp(kind):
    # v6e / v7x have a bf16 EUP path; v5e and older do not.
    return ("v6" in kind) or ("v7" in kind)


# --------------------------------------------------------------------------
# Kernel 1: fused 1x1-conv Q/K/V projection (one wide bf16 matmul per tile).
# --------------------------------------------------------------------------
def _qkv_proj_kernel(x_ref, w_ref, b_ref, q_ref, k_ref, v_ref):
    # x_ref: (1, C, tn) f32   w_ref: (2*C8p+C, C) bf16   b_ref: (2*C8p+C, 1) f32
    # q_ref/k_ref: (1, C8p, tn) bf16   v_ref: (1, C, tn) bf16
    c8p = q_ref.shape[1]
    x = x_ref[0].astype(jnp.bfloat16)                                   # (C, tn)
    qkv = jnp.dot(w_ref[...], x, preferred_element_type=jnp.float32)    # (2C8p+C, tn)
    qkv = qkv + b_ref[...]                                              # bias in f32
    q_ref[0] = qkv[:c8p].astype(jnp.bfloat16)
    k_ref[0] = qkv[c8p:2 * c8p].astype(jnp.bfloat16)
    v_ref[0] = qkv[2 * c8p:].astype(jnp.bfloat16)


# --------------------------------------------------------------------------
# Kernel 2: flash-style attention (online softmax) + gamma residual.
#   Grid (B, Np/tq, Np/tk); K/V are full-N resident blocks per batch and the
#   ki chunk is sliced inside the kernel, so they are DMA'd once per batch.
# --------------------------------------------------------------------------
def _make_flash_kernel(tk, n_valid, n_padded, use_bf16_exp):
    needs_mask = n_valid < n_padded

    def kernel(q_ref, k_ref, v_ref, x_ref, g_ref, o_ref, m_sc, l_sc, acc_sc):
        # q_ref: (1, C8p, tq) bf16     k_ref: (C8p, Np) bf16 (squeezed, resident)
        # v_ref: (C, Np) bf16 (resident)  x_ref: (1, C, tq) f32   g_ref: (1,1) SMEM
        # o_ref: (1, C, tq) f32
        # scratch: m_sc/l_sc (1, tq) f32, acc_sc (C, tq) f32
        ki = pl.program_id(2)
        off = pl.multiple_of(ki * tk, tk)

        q = q_ref[0]                                  # (C8p, tq) bf16
        k = k_ref[:, pl.ds(off, tk)]                  # (C8p, tk) bf16
        v = v_ref[:, pl.ds(off, tk)]                  # (C, tk) bf16

        # s[j, i] = sum_c k[c, j] * q[c, i]  == energy[i, j] for this tile pair.
        # Keys on sublanes, queries on lanes; no operand transposes.
        s = lax.dot_general(k, q, (((0,), (0,)), ((), ())),
                            preferred_element_type=jnp.float32)         # (tk, tq)

        if needs_mask:
            key_idx = off + lax.broadcasted_iota(jnp.int32, (tk, 1), 0)
            s = jnp.where(key_idx < n_valid, s, jnp.float32(-1e30))

        s_max = jnp.max(s, axis=0, keepdims=True)                       # (1, tq)
        m_prev = m_sc[...]
        is_first = ki == 0
        # At ki==0, m_prev is stale scratch; it is discarded by the select and
        # only used (via alpha) inside the ki>0 branch.
        m_new = jnp.where(is_first, s_max, jnp.maximum(m_prev, s_max))

        if use_bf16_exp:
            p = jnp.exp((s - m_new).astype(jnp.bfloat16))               # bf16 EUP
            p_sum = jnp.sum(p.astype(jnp.float32), axis=0, keepdims=True)
            p_mm = p
        else:
            p_f32 = jnp.exp(s - m_new)                                  # f32 EUP
            p_sum = jnp.sum(p_f32, axis=0, keepdims=True)
            p_mm = p_f32.astype(jnp.bfloat16)

        pv = jnp.dot(v, p_mm, preferred_element_type=jnp.float32)       # (C, tq)

        @pl.when(is_first)
        def _first():
            # No rescale / no accumulator read-modify-write on the first step.
            l_sc[...] = p_sum
            acc_sc[...] = pv

        @pl.when(ki > 0)
        def _rest():
            alpha = jnp.exp(m_prev - m_new)                             # (1, tq)
            l_sc[...] = alpha * l_sc[...] + p_sum
            acc_sc[...] = alpha * acc_sc[...] + pv

        m_sc[...] = m_new

        @pl.when(ki == pl.num_programs(2) - 1)
        def _finalize():
            inv_l = pl.reciprocal(l_sc[...], approx=True)               # (1, tq)
            o_ref[0] = g_ref[0, 0] * (acc_sc[...] * inv_l) + x_ref[0]

    return kernel


# --------------------------------------------------------------------------
# Wrapper
# --------------------------------------------------------------------------
def self_attn_layer(x_nchw, params):
    """Forward pass of SelfAttnLayer.

    x_nchw: (B, C, W, H) float32   (PyTorch NCHW)
    params: dict with wq (C//8, C), bq (C//8,), wk, bk, wv (C, C), bv (C,), gamma ()
    returns: (B, C, W, H) float32
    """
    B, C, W, H = x_nchw.shape
    N = W * H
    Np = ((N + 127) // 128) * 128                 # pad N to a lane-dense multiple of 128
    C8 = params["wq"].shape[0]
    C8p = ((C8 + 15) // 16) * 16                  # bf16 sublane-pack alignment
    Ctot = 2 * C8p + C

    kind = _device_kind()
    vmem_limit = _vmem_limit_bytes(kind)
    use_bf16_exp = _use_bf16_exp(kind)

    # Per-kernel tile picks (review: projection wants big mem-bound tiles,
    # attention wants small score tiles to avoid spills).
    tn = _pick_tile(Np, (2048, 1024, 512, 256, 128))   # projection N tile
    tq = _pick_tile(Np, (512, 256, 128))               # query tile
    tk = _pick_tile(Np, (256, 128))                    # key tile

    # NCHW -> (B, C, N): free reshape; pad N with zeros (padded keys are masked).
    x_cn = x_nchw.reshape(B, C, N).astype(jnp.float32)
    if Np != N:
        x_cn = jnp.pad(x_cn, ((0, 0), (0, 0), (0, Np - N)))

    def _pad_rows(a, rows):
        a = jnp.asarray(a, jnp.float32)
        if a.shape[0] < rows:
            a = jnp.pad(a, ((0, rows - a.shape[0]),) + ((0, 0),) * (a.ndim - 1))
        return a

    # Fused projection weights: rows ordered [wq; wk; wv], q/k rows padded to C8p
    # with zeros so padded channels are exactly zero (and contribute 0 energy).
    w_qkv = jnp.concatenate(
        [_pad_rows(params["wq"], C8p),
         _pad_rows(params["wk"], C8p),
         jnp.asarray(params["wv"], jnp.float32)], axis=0).astype(jnp.bfloat16)
    b_qkv = jnp.concatenate(
        [_pad_rows(params["bq"], C8p),
         _pad_rows(params["bk"], C8p),
         jnp.asarray(params["bv"], jnp.float32)], axis=0).reshape(Ctot, 1)
    gamma = jnp.asarray(params["gamma"], jnp.float32).reshape(1, 1)

    # ---- kernel 1: fused QKV projection ------------------------------------
    q, k, v = pl.pallas_call(
        _qkv_proj_kernel,
        out_shape=(jax.ShapeDtypeStruct((B, C8p, Np), jnp.bfloat16),
                   jax.ShapeDtypeStruct((B, C8p, Np), jnp.bfloat16),
                   jax.ShapeDtypeStruct((B, C, Np), jnp.bfloat16)),
        grid_spec=pltpu.PrefetchScalarGridSpec(
            num_scalar_prefetch=0,
            grid=(B, Np // tn),
            in_specs=[
                pl.BlockSpec((1, C, tn), lambda b, n: (b, 0, n)),
                pl.BlockSpec((Ctot, C), lambda b, n: (0, 0)),   # weights resident
                pl.BlockSpec((Ctot, 1), lambda b, n: (0, 0)),   # biases resident
            ],
            out_specs=[
                pl.BlockSpec((1, C8p, tn), lambda b, n: (b, 0, n)),
                pl.BlockSpec((1, C8p, tn), lambda b, n: (b, 0, n)),
                pl.BlockSpec((1, C, tn), lambda b, n: (b, 0, n)),
            ],
        ),
        compiler_params=pltpu.CompilerParams(
            dimension_semantics=("parallel", "parallel"),
            vmem_limit_bytes=vmem_limit),
    )(x_cn, w_qkv, b_qkv)

    # ---- kernel 2: flash attention + residual -------------------------------
    out_cn = pl.pallas_call(
        _make_flash_kernel(tk, N, Np, use_bf16_exp),
        out_shape=jax.ShapeDtypeStruct((B, C, Np), jnp.float32),
        grid_spec=pltpu.PrefetchScalarGridSpec(
            num_scalar_prefetch=0,
            grid=(B, Np // tq, Np // tk),
            in_specs=[
                pl.BlockSpec((1, C8p, tq), lambda b, qi, ki: (b, 0, qi)),   # q tile
                pl.BlockSpec((None, C8p, Np), lambda b, qi, ki: (b, 0, 0)),  # K resident / batch
                pl.BlockSpec((None, C, Np), lambda b, qi, ki: (b, 0, 0)),    # V resident / batch
                pl.BlockSpec((1, C, tq), lambda b, qi, ki: (b, 0, qi)),     # x (residual)
                pl.BlockSpec(memory_space=pltpu.MemorySpace.SMEM),          # gamma scalar
            ],
            out_specs=pl.BlockSpec((1, C, tq), lambda b, qi, ki: (b, 0, qi)),
            scratch_shapes=[
                pltpu.VMEM((1, tq), jnp.float32),   # running max
                pltpu.VMEM((1, tq), jnp.float32),   # running sum
                pltpu.VMEM((C, tq), jnp.float32),   # f32 output accumulator
            ],
        ),
        compiler_params=pltpu.CompilerParams(
            dimension_semantics=("parallel", "parallel", "arbitrary"),
            vmem_limit_bytes=vmem_limit),
    )(q, k, v, x_cn, gamma)

    if Np != N:
        out_cn = out_cn[:, :, :N]
    # (B, C, N) -> NCHW: free reshape, no transpose.
    return out_cn.reshape(B, C, W, H)


# --------------------------------------------------------------------------
# Pure-JAX reference mirroring the PyTorch forward exactly (f32).
# --------------------------------------------------------------------------
def _reference(x_nchw, params):
    B, C, W, H = x_nchw.shape
    N = W * H
    x = x_nchw.astype(jnp.float32)
    xf = x.reshape(B, C, N)                                      # (B, C, N)

    def conv1x1(w, b):
        return jnp.einsum("oc,bcn->bon", w, xf) + b[None, :, None]

    q = conv1x1(params["wq"], params["bq"])                      # (B, C8, N)
    k = conv1x1(params["wk"], params["bk"])                      # (B, C8, N)
    v = conv1x1(params["wv"], params["bv"])                      # (B, C, N)

    proj_q = jnp.transpose(q, (0, 2, 1))                         # (B, N, C8)
    energy = jnp.einsum("bnc,bcm->bnm", proj_q, k)               # (B, N, N)
    attn = jax.nn.softmax(energy, axis=-1)
    out = jnp.einsum("bcn,bmn->bcm", v, attn)                    # (B, C, N)
    out = out.reshape(B, C, W, H)
    return params["gamma"] * out + x


if __name__ == "__main__":
    # Small shapes consistent with the module: in_dim must be >= 8 so C//8 >= 1.
    B, C, W, H = 2, 32, 8, 8

    key = jax.random.PRNGKey(0)
    k_x, k_wq, k_bq, k_wk, k_bk, k_wv, k_bv = jax.random.split(key, 7)

    C8 = C // 8
    params = {
        "wq": jax.random.normal(k_wq, (C8, C), jnp.float32) * 0.1,
        "bq": jax.random.normal(k_bq, (C8,), jnp.float32) * 0.1,
        "wk": jax.random.normal(k_wk, (C8, C), jnp.float32) * 0.1,
        "bk": jax.random.normal(k_bk, (C8,), jnp.float32) * 0.1,
        "wv": jax.random.normal(k_wv, (C, C), jnp.float32) * 0.1,
        "bv": jax.random.normal(k_bv, (C,), jnp.float32) * 0.1,
        # nn.Parameter(torch.zeros(1)) in the module; set nonzero here so the
        # attention path actually contributes to the output in this test.
        "gamma": jnp.float32(0.5),
    }

    x = jax.random.normal(k_x, (B, C, W, H), jnp.float32)

    out = self_attn_layer(x, params)
    out = jax.block_until_ready(out)

    ref = _reference(x, params)
    assert out.shape == (B, C, W, H)
    err = float(jnp.max(jnp.abs(out - ref)))
    # Matmuls use bf16 operands (f32 accumulation / f32 softmax stats), so
    # compare against the f32 reference at a bf16-level tolerance.
    assert jnp.allclose(out, ref, atol=2e-2, rtol=2e-2), err

    print("KERNEL_OK")
</pallas_src>

<mosaic_0001>
module attributes {stable_mosaic.version = 11 : i64} {
  func.func @_qkv_proj_kernel(%arg0: i32, %arg1: i32, %arg2: memref<1x32x128xf32, #tpu.memory_space<vmem>>, %arg3: memref<64x32xbf16, #tpu.memory_space<vmem>>, %arg4: memref<64x1xf32, #tpu.memory_space<vmem>>, %arg5: memref<1x16x128xbf16, #tpu.memory_space<vmem>>, %arg6: memref<1x16x128xbf16, #tpu.memory_space<vmem>>, %arg7: memref<1x32x128xbf16, #tpu.memory_space<vmem>>) attributes {dimension_semantics = [#tpu.dimension_semantics<parallel>, #tpu.dimension_semantics<parallel>], iteration_bounds = array<i64: 2, 1>, scalar_prefetch = 0 : i64, scratch_operands = 0 : i64, tpu.core_type = #tpu.core_type<tc>, window_params = [{transform_indices = @transform_0, window_bounds = array<i64: 1, 32, 128>}, {pipeline_mode = #tpu.pipeline_mode<synchronous>, transform_indices = @transform_1, window_bounds = array<i64: 64, 32>}, {pipeline_mode = #tpu.pipeline_mode<synchronous>, transform_indices = @transform_2, window_bounds = array<i64: 64, 1>}, {transform_indices = @transform_3, window_bounds = array<i64: 1, 16, 128>}, {transform_indices = @transform_4, window_bounds = array<i64: 1, 16, 128>}, {transform_indices = @transform_5, window_bounds = array<i64: 1, 32, 128>}]} {
    %c0 = arith.constant 0 : index
    %c0_0 = arith.constant 0 : index
    %c0_1 = arith.constant 0 : index
    %0 = vector.load %arg2[%c0, %c0_0, %c0_1] : memref<1x32x128xf32, #tpu.memory_space<vmem>>, vector<1x32x128xf32>
    %1 = vector.shape_cast %0 : vector<1x32x128xf32> to vector<32x128xf32>
    %2 = arith.truncf %1 : vector<32x128xf32> to vector<32x128xbf16>
    %c0_2 = arith.constant 0 : index
    %c0_3 = arith.constant 0 : index
    %3 = vector.load %arg3[%c0_2, %c0_3] : memref<64x32xbf16, #tpu.memory_space<vmem>>, vector<64x32xbf16>
    %cst = arith.constant dense<0.000000e+00> : vector<64x128xf32>
    %4 = tpu.matmul %3, %2, %cst {dimension_numbers = #tpu.dot_dimension_numbers<[1], [0], [0], [1], [0, 0, 1, 1], [], []>} : vector<64x32xbf16>, vector<32x128xbf16>, vector<64x128xf32> -> vector<64x128xf32>
    %c0_4 = arith.constant 0 : index
    %c0_5 = arith.constant 0 : index
    %5 = vector.load %arg4[%c0_4, %c0_5] : memref<64x1xf32, #tpu.memory_space<vmem>>, vector<64x1xf32>
    %6 = vector.broadcast %5 : vector<64x1xf32> to vector<64x128xf32>
    %7 = arith.addf %4, %6 : vector<64x128xf32>
    %8 = vector.extract_strided_slice %7 {offsets = [0, 0], sizes = [16, 128], strides = [1, 1]} : vector<64x128xf32> to vector<16x128xf32>
    %9 = arith.truncf %8 : vector<16x128xf32> to vector<16x128xbf16>
    %c0_6 = arith.constant 0 : index
    %c0_7 = arith.constant 0 : index
    %c0_8 = arith.constant 0 : index
    %10 = vector.load %arg5[%c0_6, %c0_7, %c0_8] : memref<1x16x128xbf16, #tpu.memory_space<vmem>>, vector<1x16x128xbf16>
    %11 = vector.shape_cast %10 : vector<1x16x128xbf16> to vector<16x128xbf16>
    %12 = vector.shape_cast %9 : vector<16x128xbf16> to vector<1x16x128xbf16>
    tpu.vector_store %arg5[%c0_6, %c0_7, %c0_8], %12 {strides = array<i32>} : memref<1x16x128xbf16, #tpu.memory_space<vmem>>, vector<1x16x128xbf16>,
    %13 = vector.extract_strided_slice %7 {offsets = [16, 0], sizes = [16, 128], strides = [1, 1]} : vector<64x128xf32> to vector<16x128xf32>
    %14 = arith.truncf %13 : vector<16x128xf32> to vector<16x128xbf16>
    %c0_9 = arith.constant 0 : index
    %c0_10 = arith.constant 0 : index
    %c0_11 = arith.constant 0 : index
    %15 = vector.load %arg6[%c0_9, %c0_10, %c0_11] : memref<1x16x128xbf16, #tpu.memory_space<vmem>>, vector<1x16x128xbf16>
    %16 = vector.shape_cast %15 : vector<1x16x128xbf16> to vector<16x128xbf16>
    %17 = vector.shape_cast %14 : vector<16x128xbf16> to vector<1x16x128xbf16>
    tpu.vector_store %arg6[%c0_9, %c0_10, %c0_11], %17 {strides = array<i32>} : memref<1x16x128xbf16, #tpu.memory_space<vmem>>, vector<1x16x128xbf16>,
    %18 = vector.extract_strided_slice %7 {offsets = [32, 0], sizes = [32, 128], strides = [1, 1]} : vector<64x128xf32> to vector<32x128xf32>
    %19 = arith.truncf %18 : vector<32x128xf32> to vector<32x128xbf16>
    %c0_12 = arith.constant 0 : index
    %c0_13 = arith.constant 0 : index
    %c0_14 = arith.constant 0 : index
    %20 = vector.load %arg7[%c0_12, %c0_13, %c0_14] : memref<1x32x128xbf16, #tpu.memory_space<vmem>>, vector<1x32x128xbf16>
    %21 = vector.shape_cast %20 : vector<1x32x128xbf16> to vector<32x128xbf16>
    %22 = vector.shape_cast %19 : vector<32x128xbf16> to vector<1x32x128xbf16>
    tpu.vector_store %arg7[%c0_12, %c0_13, %c0_14], %22 {strides = array<i32>} : memref<1x32x128xbf16, #tpu.memory_space<vmem>>, vector<1x32x128xbf16>,
    return
  }
  func.func @transform_0(%arg0: i32, %arg1: i32) -> (i32, i32, i32) {
    %c0_i32 = arith.constant 0 : i32
    %c0_i32_0 = arith.constant 0 : i32
    return %arg0, %c0_i32, %arg1 : i32, i32, i32
  }
  func.func @transform_1(%arg0: i32, %arg1: i32) -> (i32, i32) {
    %c0_i32 = arith.constant 0 : i32
    %c0_i32_0 = arith.constant 0 : i32
    %c0_i32_1 = arith.constant 0 : i32
    return %c0_i32, %c0_i32_0 : i32, i32
  }
  func.func @transform_2(%arg0: i32, %arg1: i32) -> (i32, i32) {
    %c0_i32 = arith.constant 0 : i32
    %c0_i32_0 = arith.constant 0 : i32
    %c0_i32_1 = arith.constant 0 : i32
    return %c0_i32, %c0_i32_0 : i32, i32
  }
  func.func @transform_3(%arg0: i32, %arg1: i32) -> (i32, i32, i32) {
    %c0_i32 = arith.constant 0 : i32
    %c0_i32_0 = arith.constant 0 : i32
    return %arg0, %c0_i32, %arg1 : i32, i32, i32
  }
  func.func @transform_4(%arg0: i32, %arg1: i32) -> (i32, i32, i32) {
    %c0_i32 = arith.constant 0 : i32
    %c0_i32_0 = arith.constant 0 : i32
    return %arg0, %c0_i32, %arg1 : i32, i32, i32
  }
  func.func @transform_5(%arg0: i32, %arg1: i32) -> (i32, i32, i32) {
    %c0_i32 = arith.constant 0 : i32
    %c0_i32_0 = arith.constant 0 : i32
    return %arg0, %c0_i32, %arg1 : i32, i32, i32
  }
}

</mosaic_0001>

<bundles_post_ra>
// kernel: tpu_custom_call.1
= control target key start
LH: loop header
LB: loop body
LE: loop exit
PB: predicated region body
PF: predicated region fallthrough
CT: control target
= control target key end

     0   :  { %s1263_s0 = inlined_call_operand.vmem [shape: f32[2,32,128], index: 0, kind: input, shape index: {}]   ;;  %s1264_s1 = inlined_call_operand.vmem [shape: bf16[64,32], index: 1, kind: input, shape index: {}]   ;;  %s1265_s2 = inlined_call_operand.vmem [shape: f32[64,1], index: 2, kind: input, shape index: {}]   ;;  %s1266_s3 = inlined_call_operand.hbm [shape: bf16[2,16,128], index: 3, kind: output, shape index: {0}]   ;;  %s1267_s4 = inlined_call_operand.hbm [shape: bf16[2,16,128], index: 4, kind: output, shape index: {1}]   ;;  %s1268_s5 = inlined_call_operand.hbm [shape: bf16[2,32,128], index: 5, kind: output, shape index: {2}]  }
   0x1   :  { %1270 = sst [smem:[#allocation9_spill]] %s1263_s0 }
   0x2   :  { %1271 = sst [smem:[#allocation10_spill]] %s1264_s1 }
   0x3   :  { %1272 = sst [smem:[#allocation11_spill]] %s1265_s2 }
   0x4   :  { %11 = vsyncpa [#allocation3], 0 }
   0x5   :  { %13 = vsyncpa [#allocation3 + $0x1], 0 }
   0x6   :  { %14 = vsyncpa [#allocation5], 0 }
   0x7   :  { %16 = vsyncpa [#allocation5 + $0x1], 0  ;;  %s1015_s18 = smov 0   ;;  %s1017_s19 = smov 0  }
   0x8   :  { %s1019_s20 = smov 0   ;;  %s1021_s21 = smov 0  }
   0x9   :  { %s1023_s22 = smov 0   ;;  %s1025_s23 = smov 0  }
   0xa LB: > { %s673_s24 = sadd.s32 4294967295, %s977_s23   ;;  %s1269_s25 = sadd.s32 4294967294, %s977_s23   ;;  %s977_s23 = sphi %s1025_s23, %s22_s23   ;;  %s973_s22 = sphi %s1023_s22, %s1283_s22   ;;  %s969_s21 = sphi %s1021_s21, %s1282_s21   ;;  %s965_s20 = sphi %s1019_s20, %s1281_s20   ;;  %s961_s19 = sphi %s1017_s19, %s1280_s19   ;;  %s957_s18 = sphi %s1015_s18, %s1279_s18  }
   0xb   : > { %s34_s26 = sadd.s32 1, %s973_s22  ;;  %s113_s27 = sadd.s32 1, %s965_s20 }
   0xc   : > { %p36_p0 = scmp.ge.s32.totalorder %s34_s26, 2  ;;  %p123_p1 = scmp.ne.s32.totalorder %s965_s20, %s961_s19 }
   0xd   : > { %p124_p2 = scmp.eq.s32.totalorder %s673_s24, 1  ;;  %p129_p3 = scmp.ne.s32.totalorder %s961_s19, %s957_s18 }
   0xe   : > { %s1285_s26 = smov (%p36_p0, %s34_s26), 0  ;;  %p130_p5 = scmp.eq.s32.totalorder %s1269_s25, 1 }
   0xf   : > { %p1057_p4 = por %p124_p2, %p123_p1  ;;  %s108_s29 = ssub.s32 %s973_s22, %s1285_s26 }
  0x10   : > { %p677_p6 = scmp.ge.s32.totalorder %s977_s23, 1  ;;  %p111_p7 = scmp.eq.s32.totalorder %s108_s29, 0 }
  0x11   : > { %p1066_p8 = por %p130_p5, %p129_p3  ;;  %p221_p9 = scmp.lt.s32.totalorder %s977_s23, 3 }
  0x12   : > { %s1072_s6 = scalar_select %p111_p7, %s965_s20, %s113_s27  }
  0x13   : > { %p222_p10 = pnand %p677_p6, %p221_p9 }
  0x14   : > { %p262_p11 = scmp.lt.s32.totalorder (!%p222_p10), %s969_s21, 1  ;;  %s1275_s1 = sld [smem:[#allocation10_spill]] (!%p222_p10)  ;;  %vm353_vm0 = vcmask (!%p222_p10), 261120   ;;  %v979_v2 = vmov (!%p222_p10), 0  }
  0x15   : > { %225 = sbr.rel (%p222_p10) target bundleno = 327 (0x147), region = 32  ;;  %834 = vset.pattern.permute.xlu1 (!%p222_p10), %v979_v2  ;;  %833 = vset.pattern.permute.xlu0 (!%p222_p10), %v979_v2  ;;  %s1276_s2 = sld [smem:[#allocation11_spill]] (!%p222_p10) }
  0x16   : > { %s1277_s0 = sld [smem:[#allocation9_spill]] (!%p222_p10)  ;;  %s1120_s10 = sand.u32 (!%p222_p10), 1, %s961_s19  }
  0x17   : > { %s1132_s17 = sand.u32 (!%p222_p10), 1, %s673_s24   ;;  %s719_s7 = sshll.u32 (!%p222_p10), %s969_s21, 7 }
  0x18   : > { %s721_s24 = sshll.u32 (!%p222_p10), %s969_s21, 8  ;;  %s477_s8 = scalar_lea.sflag (!%p222_p10), [#allocation5], %s1132_s17 }
  0x19   : > { %s980_s25 = smov (!%p222_p10), [#allocation4]  }
  0x1a   : > { %v835_v0 = vld [vmem:[%s1275_s1] sm:$0xff] (!%p222_p10)   ;;  %v836_v1 = vld [vmem:[%s1275_s1 + $0x10] sm:$0xff] (!%p222_p10)   ;;  %v837_v13 = vld [vmem:[%s1275_s1 + $0x8] sm:$0xff] (!%p222_p10)  }
  0x1b   : > { %753 = vmatprep.mubr.msk.bf16.mxu0 (!%p222_p10), %vm353_vm0, %v835_v0  ;;  %757 = vmatprep.mubr.msk.bf16.mxu1 (!%p222_p10), %vm353_vm0, %v836_v1  ;;  %v287_v3 = vld [vmem:[%s1276_s2 + $0x10] sm:$0xff] (!%p222_p10)  ;;  %v285_v4 = vld [vmem:[%s1276_s2] sm:$0xff] (!%p222_p10)  ;;  %v288_v11 = vld [vmem:[%s1276_s2 + $0x18] sm:$0xff] (!%p222_p10) }
  0x1c   : > { %s263_s11 = scalar_select %p262_p11, %s969_s21, 1  ;;  %305 = vperm.xlu0 %833, %v287_v3   ;;  %295 = vperm.xlu1 %834, %v285_v4   ;;  %v286_v12 = vld [vmem:[%s1276_s2 + $0x8] sm:$0xff]  ;;  %v838_v14 = vld [vmem:[%s1275_s1 + $0x18] sm:$0xff]   ;;  %v289_v15 = vld [vmem:[%s1276_s2 + $0x20] sm:$0xff] }
  0x1d   : > { %v290_v16 = vld [vmem:[%s1276_s2 + $0x28] sm:$0xff]  ;;  %v291_v17 = vld [vmem:[%s1276_s2 + $0x30] sm:$0xff]  ;;  %v292_v18 = vld [vmem:[%s1276_s2 + $0x38] sm:$0xff]  ;;  %s1156_s2 = scalar_lea.hbm %s1268_s5, %s721_s24 }
  0x1e   : > { %s710_s12 = sshll.u32 %s263_s11, 5  ;;  %s678_s11 = sshll.u32 %s1120_s10, 3 }
  0x1f   : > { %s269_s29 = scalar_lea.vmem %s1277_s0, %s710_s12  ;;  %s680_s12 = sshll.u32 %s1120_s10, 4 }
  0x20   : > { %v271_v5 = vld [vmem:[%s269_s29] sm:$0xff]  ;;  %v272_v6 = vld [vmem:[%s269_s29 + $0x8] sm:$0xff]  ;;  %v273_v7 = vld [vmem:[%s269_s29 + $0x10] sm:$0xff]  ;;  %310 = vperm.xlu0 %833, %v288_v11   ;;  %300 = vperm.xlu1 %834, %v286_v12   ;;  %s1124_s13 = scalar_lea.vmem [#allocation4], %s678_s11  ;;  %s1127_s15 = scalar_lea.vmem [#allocation2], %s678_s11 }
  0x21   : > { %v275_v8 = vpack.c.bf16 %v272_v6, %v271_v5  ;;  %v274_v9 = vld [vmem:[%s269_s29 + $0x18] sm:$0xff]  ;;  %s513_s14 = sshll.u32 %s1124_s13, 4  ;;  %s496_s16 = sshll.u32 %s1127_s15, 4  ;;  %s1134_s14 = int_to_ptr.vmem [resolvable:$true] %s513_s14  ;;  %s1137_s16 = int_to_ptr.vmem [resolvable:$true] %s496_s16 }
  0x22   : > { %v276_v10 = vpack.c.bf16 %v274_v9, %v273_v7  ;;  %s261_s27 = scalar_lea.vmem [#allocation6], %s680_s12  ;;  %s1143_s11 = scalar_lea.hbm %s1267_s4, %s719_s7 }
  0x23   : > { %749 = vmatprep.subr.bf16.mxu0 %v275_v8  ;;  %761 = vmatprep.subr.bf16.mxu1 %v275_v8  ;;  %s530_s29 = sshll.u32 %s261_s27, 4  ;;  %s1148_s0 = scalar_lea.hbm %s1266_s3, %s719_s7  ;;  %s1151_s29 = int_to_ptr.vmem [resolvable:$true] %s530_s29 }
  0x24   : > { %750 = vmatpush3.bf16.msra.mxu0 %v275_v8  ;;  %763 = vmatpush3.bf16.msra.mxu1 %v275_v8  ;;  %s839_s9 = scalar_lea.vmem %s1134_s14, 128  ;;  %s843_s7 = sshll.u32 %s980_s25, 4  ;;  %s844_s7 = int_to_ptr.vmem [resolvable:$false] %s843_s7 }
  0x25   : > { %751 = vmatprep.subr.bf16.mxu0 %v276_v10  ;;  %762 = vmatprep.subr.bf16.mxu1 %v276_v10  ;;  %p840_p12 = scmp.ne.s32.totalorder %s1134_s14, %s839_s9  ;;  %p846_p1 = scmp.lt.s32.totalorder %s1134_s14, %s844_s7 }
  0x26   : > { %315 = vperm.xlu0 %833, %v289_v15   ;;  %320 = vperm.xlu1 %834, %v290_v16  }
  0x27   : > { %p841_p13 = pnand %p840_p12, %p1057_p4 }
  0x28   : > { %752 = vmatpush3.bf16.msra.mxu0 %v276_v10  ;;  %764 = vmatpush3.bf16.msra.mxu1 %v276_v10 }
  0x29   : > { %p842_p0 = pneg %p841_p13 }
  0x2a   : > { %325 = vperm.xlu0 %833, %v291_v17   ;;  %330 = vperm.xlu1 %834, %v292_v18  }
  0x2b   : > { %754 = vmatmul.mubr.msk.bf16.vlgmr.msra.gmra.mrb[0].mxu0 %vm353_vm0, %v837_v13  ;;  %758 = vmatmul.mubr.msk.bf16.vlgmr.msra.gmra.mrb[0].mxu1 %vm353_vm0, %v838_v14 }
  0x9b   : > { %v306_v19 = vpop.permute.xlu0 %305  ;;  %v296_v20 = vpop.permute.xlu1 %295 }
  0x9f   : > { %v311_v21 = vpop.permute.xlu0 %310  ;;  %v301_v22 = vpop.permute.xlu1 %300 }
  0xa5   : > { %v316_v23 = vpop.permute.xlu0 %315  ;;  %v321_v24 = vpop.permute.xlu1 %320 }
  0xa9   : > { %v326_v25 = vpop.permute.xlu0 %325  ;;  %v331_v26 = vpop.permute.xlu1 %330 }
  0xfe   : > { %v755_v27 = vpop.f32.mrb[0].mxu0  ;;  %v759_v28 = vpop.f32.mrb[0].mxu1 }
  0xff   : > { %v400_v29 = vpop.f32.mrb[1].mxu0  ;;  %v416_v30 = vpop.f32.mrb[1].mxu1  ;;  %v409_v33 = vadd.f32 %v755_v27, %v306_v19  ;;  %v425_v34 = vadd.f32 %v759_v28, %v326_v25 }
 0x100   : > { %v756_v31 = vpop.f32.mrb[2].mxu0  ;;  %v760_v32 = vpop.f32.mrb[2].mxu1  ;;  %v401_v39 = vadd.f32 %v400_v29, %v296_v20  ;;  %v417_v40 = vadd.f32 %v416_v30, %v316_v23 }
 0x101   : > { %v412_v35 = vadd.f32 %v756_v31, %v311_v21  ;;  %v428_v36 = vadd.f32 %v760_v32, %v331_v26  ;;  %v403_v37 = vpop.f32.mrb[3].mxu0  ;;  %v419_v38 = vpop.f32.mrb[3].mxu1 }
 0x102   : > { %v404_v41 = vadd.f32 %v403_v37, %v301_v22  ;;  %v420_v42 = vadd.f32 %v419_v38, %v321_v24 }
 0x103   : > { %v730_v43 = vpack.c.bf16 %v412_v35, %v409_v33  ;;  %v740_v44 = vpack.c.bf16 %v428_v36, %v425_v34 }
 0x104   : > { %v725_v45 = vpack.c.bf16 %v404_v41, %v401_v39  ;;  %v735_v46 = vpack.c.bf16 %v420_v42, %v417_v40 }
 0x105   : > { %731 = vst [vmem:[%s1124_s13] sm:$0xff] %v730_v43   ;;  %742 = vst [vmem:[%s261_s27 + $0x8] sm:$0xff] %v740_v44   ;;  %s845_s13 = scalar_lea.vmem %s844_s7, 256 }
 0x106   : > { %726 = vst [vmem:[%s1127_s15] sm:$0xff] %v725_v45   ;;  %736 = vst [vmem:[%s261_s27] sm:$0xff] %v735_v46   ;;  %p847_p2 = scmp.lt.s32.totalorder %s845_s13, %s839_s9 }
 0x108   : > { %p848_p3 = por %p847_p2, %p846_p1 }
 0x10a   : > { %p849_p5 = pnand %p848_p3, %p842_p0 }
 0x10c   : > { %852 = shalt.err (!%p849_p5)
}
 0x10d   : > { %s853_s1 = scalar_lea.hbm %s1143_s11, 128  ;;  %s857_s24 = scalar_lea.hbm %s1267_s4, 256 }
 0x10e   : > { %p854_p6 = scmp.ne.s32.totalorder %s1143_s11, %s853_s1  ;;  %p858_p10 = scmp.lt.u32.totalorder %s1143_s11, %s1267_s4 }
 0x10f   : > { %p859_p11 = scmp.lt.u32.totalorder %s857_s24, %s853_s1  ;;  %p861_p13 = scmp.lt.u32.totalorder %s853_s1, %s1143_s11 }
 0x110   : > { %p855_p7 = pnand %p854_p6, %p1057_p4 }
 0x111   : > { %p860_p12 = por %p859_p11, %p858_p10 }
 0x112   : > { %p856_p9 = pneg %p855_p7 }
 0x113   : > { %p862_p0 = por %p861_p13, %p860_p12 }
 0x115   : > { %p863_p1 = pnand %p862_p0, %p856_p9 }
 0x117   : > { %866 = shalt.err (!%p863_p1)
}
 0x118   : > { %s981_s9 = smov 64   ;;  %s982_s25 = smov 4  }
 0x119   : > { %766 = dma.vmem_to_hbm [thread:$0]  (%p1057_p4), %s1134_s14, 128, %s1143_s11, %s477_s8, %s981_s9, %s981_s9, %s982_s25  }
 0x11a   : > { %s472_s7 = scalar_lea.sflag [#allocation3], %s1120_s10  ;;  %s867_s13 = scalar_lea.vmem %s1137_s16, 128 }
 0x11b   : > { %p868_p2 = scmp.ne.s32.totalorder %s1137_s16, %s867_s13  ;;  %s983_s1 = smov [#allocation2]  }
 0x11c   : > { %s871_s15 = sshll.u32 %s983_s1, 4  ;;  %s872_s15 = int_to_ptr.vmem [resolvable:$false] %s871_s15 }
 0x11d   : > { %p869_p3 = pnand %p868_p2, %p1057_p4  ;;  %s873_s27 = scalar_lea.vmem %s872_s15, 256 }
 0x11e   : > { %p874_p6 = scmp.lt.s32.totalorder %s1137_s16, %s872_s15  ;;  %p875_p7 = scmp.lt.s32.totalorder %s873_s27, %s867_s13 }
 0x11f   : > { %p870_p5 = pneg %p869_p3 }
 0x120   : > { %p876_p9 = por %p875_p7, %p874_p6 }
 0x122   : > { %p877_p10 = pnand %p876_p9, %p870_p5 }
 0x124   : > { %880 = shalt.err (!%p877_p10)
}
 0x125   : > { %s881_s14 = scalar_lea.hbm %s1148_s0, 128  ;;  %s885_s12 = scalar_lea.hbm %s1266_s3, 256 }
 0x126   : > { %p882_p11 = scmp.ne.s32.totalorder %s1148_s0, %s881_s14  ;;  %p886_p0 = scmp.lt.u32.totalorder %s1148_s0, %s1266_s3 }
 0x127   : > { %p887_p1 = scmp.lt.u32.totalorder %s885_s12, %s881_s14  ;;  %p889_p3 = scmp.lt.u32.totalorder %s881_s14, %s1148_s0 }
 0x128   : > { %p883_p12 = pnand %p882_p11, %p1057_p4 }
 0x129   : > { %p888_p2 = por %p887_p1, %p886_p0 }
 0x12a   : > { %p884_p13 = pneg %p883_p12 }
 0x12b   : > { %p890_p5 = por %p889_p3, %p888_p2 }
 0x12d   : > { %p891_p6 = pnand %p890_p5, %p884_p13 }
 0x12f   : > { %894 = shalt.err (!%p891_p6)
}
 0x130   : > { %765 = dma.vmem_to_hbm [thread:$0]  (%p1057_p4), %s1137_s16, 128, %s1148_s0, %s472_s7, %s981_s9, %s981_s9, %s982_s25  }
 0x131   : > { %s895_s13 = scalar_lea.vmem %s1151_s29, 256  ;;  %s984_s15 = smov [#allocation6]  }
 0x132   : > { %p896_p7 = scmp.ne.s32.totalorder %s1151_s29, %s895_s13  ;;  %s899_s27 = sshll.u32 %s984_s15, 4  ;;  %s900_s27 = int_to_ptr.vmem [resolvable:$false] %s899_s27 }
 0x133   : > { %s901_s14 = scalar_lea.vmem %s900_s27, 512  ;;  %p902_p11 = scmp.lt.s32.totalorder %s1151_s29, %s900_s27 }
 0x134   : > { %p897_p9 = pnand %p896_p7, %p1057_p4  ;;  %p903_p12 = scmp.lt.s32.totalorder %s901_s14, %s895_s13 }
 0x136   : > { %p898_p10 = pneg %p897_p9  ;;  %p904_p13 = por %p903_p12, %p902_p11 }
 0x138   : > { %p905_p0 = pnand %p904_p13, %p898_p10 }
 0x13a   : > { %908 = shalt.err (!%p905_p0)
}
 0x13b   : > { %s909_s0 = scalar_lea.hbm %s1156_s2, 256  ;;  %s913_s7 = scalar_lea.hbm %s1268_s5, 512 }
 0x13c   : > { %p910_p1 = scmp.ne.s32.totalorder %s1156_s2, %s909_s0  ;;  %p914_p5 = scmp.lt.u32.totalorder %s1156_s2, %s1268_s5 }
 0x13d   : > { %p915_p6 = scmp.lt.u32.totalorder %s913_s7, %s909_s0  ;;  %p917_p9 = scmp.lt.u32.totalorder %s909_s0, %s1156_s2 }
 0x13e   : > { %p911_p2 = pnand %p910_p1, %p1057_p4 }
 0x13f   : > { %p916_p7 = por %p915_p6, %p914_p5 }
 0x140   : > { %p912_p3 = pneg %p911_p2 }
 0x141   : > { %p918_p10 = por %p917_p9, %p916_p7 }
 0x143   : > { %p919_p11 = pnand %p918_p10, %p912_p3 }
 0x145   : > { %922 = shalt.err (!%p919_p11)
}
 0x146   : > { %767 = dma.vmem_to_hbm [thread:$0]  (%p1057_p4), %s1151_s29, 256, %s1156_s2, %s477_s8, %s981_s9, %s981_s9, %s982_s25  }
 0x147 PF: > { %p781_p12 = scmp.ge.s32.totalorder %s977_s23, 2  ;;  %s545_s12 = sand.u32 1, %s957_s18  }
 0x148   : > { %s546_s21 = scalar_lea.sflag [#allocation3], %s545_s12 }
 0x149   : > { %p772_p13 = pnand %p781_p12, %p1066_p8 }
 0x14b   : > { %948 = dma.done.wait (!%p772_p13), %s546_s21, 128  }
 0x14c   : > { %950 = vsyncadd (!%p772_p13), %s546_s21, 4294967168  ;;  %s1278_s28 = sadd.s32 4294967294, %s977_s23  }
 0x14d   : > { %s554_s1 = sand.u32 1, %s1278_s28  }
 0x14e   : > { %s555_s13 = scalar_lea.sflag [#allocation5], %s554_s1 }
 0x14f   : > { %952 = dma.done.wait (!%p772_p13), %s555_s13, 384  }
 0x150   : > { %954 = vsyncadd (!%p772_p13), %s555_s13, 4294966912  ;;  %s22_s23 = sadd.s32 1, %s977_s23   ;;  %s1279_s18 = smov %s961_s19 }
 0x151   : > { %p19_p4 = scmp.ge.s32.totalorder %s22_s23, 4   ;;  %s1280_s19 = smov %s965_s20 }
 0x152   : > { %s1281_s20 = smov %s1072_s6  ;;  %s1282_s21 = smov %s973_s22 }
 0x153   : > { %s1283_s22 = smov %s1285_s26  ;;  %21 = sbr.rel (!%p19_p4) target bundleno = 10 (0xa), region = 99 }
 0x15a   :  { %569 = vsyncpa [#allocation3], 1 }
 0x15b   :  { %571 = vsyncpa [#allocation3 + $0x1], 1 }
 0x15c   :  { %572 = vsyncpa [#allocation5], 1 }
 0x15d   :  { %574 = vsyncpa [#allocation5 + $0x1], 1 }

</bundles_post_ra>
